<compile_context>
chip_gen: v7x
topology: tpu7x:2x2x1
jax: 0.10.0
libtpu: 0.0.40
codegen_flags: <defaults>
</compile_context>

<pallas_src>
import math

import jax
import jax.numpy as jnp
from jax.experimental import pallas as pl
from jax.experimental.pallas import tpu as pltpu


# ----------------------------- Pallas kernel --------------------------------
def _mlp_kernel(inp_ref, cvec_ref, wt1t_ref, wt2t_ref, wm1t_ref, wm2t_ref,
                wm3t_ref, out_ref):
    # Static dims recovered from ref shapes (all compile-time constants).
    A = out_ref.shape[0]                 # action_dim
    t_dim = wt2t_ref.shape[0]
    half = t_dim // 2
    H = wm2t_ref.shape[0]                # hidden_dim
    f32 = jnp.float32

    def mish(v):
        # mish(v) = v * tanh(softplus(v)) = v * u*(u+2) / (u*(u+2) + 2), u=exp(v)
        # Single exp + approx reciprocal (EUP); clamp/select guards large v.
        u = jnp.exp(jnp.minimum(v, 20.0))
        n = u * (u + 2.0)
        return jnp.where(v > 20.0, v, v * n * pl.reciprocal(n + 2.0, approx=True))

    # ---- static sublane slices of the streamed (feat, TB) slab ----
    x_t = inp_ref[0:A, :]                        # (A,  TB)
    time_row = inp_ref[A:A + 1, :]               # (1,  TB)
    s_t = inp_ref[A + 1:, :]                     # (S,  TB)

    # ---- static slices of the packed constant column vector ----
    o = 0
    freqs = cvec_ref[o:o + half, :]; o += half           # (half, 1)
    bt1 = cvec_ref[o:o + 2 * t_dim, :]; o += 2 * t_dim   # (2t, 1)
    bt2 = cvec_ref[o:o + t_dim, :]; o += t_dim           # (t, 1)
    bm1 = cvec_ref[o:o + H, :]; o += H                    # (H, 1)
    bm2 = cvec_ref[o:o + H, :]; o += H                    # (H, 1)
    bm3 = cvec_ref[o:o + A, :]                            # (A, 1)

    # ---- SinusoidalPosEmb, batch on lanes: (half,1)*(1,TB) -> (half,TB) ----
    ang = freqs * time_row
    sin_e = jnp.sin(ang)
    cos_e = jnp.cos(ang)

    # ---- time_mlp: Linear(t, 2t) -> Mish -> Linear(2t, t) ----
    # Split-weight matmuls replace concat([sin, cos]).
    wt1t = wt1t_ref[...]                                  # (2t, t)
    h = (jnp.dot(wt1t[:, :half], sin_e, preferred_element_type=f32)
         + jnp.dot(wt1t[:, half:], cos_e, preferred_element_type=f32)
         + bt1)
    h = mish(h)
    t_emb = jnp.dot(wt2t_ref[...], h, preferred_element_type=f32) + bt2   # (t, TB)

    # ---- mid_layer: Linear -> Mish -> Linear -> Mish -> Linear ----
    # Split-weight matmuls replace concat([x, t, state]).
    wm1t = wm1t_ref[...]                                  # (H, A+t+S)
    h = (jnp.dot(wm1t[:, :A], x_t, preferred_element_type=f32)
         + jnp.dot(wm1t[:, A:A + t_dim], t_emb, preferred_element_type=f32)
         + jnp.dot(wm1t[:, A + t_dim:], s_t, preferred_element_type=f32)
         + bm1)
    h = mish(h)
    h = jnp.dot(wm2t_ref[...], h, preferred_element_type=f32) + bm2
    h = mish(h)
    h = jnp.dot(wm3t_ref[...], h, preferred_element_type=f32) + bm3       # (A, TB)

    # ---- final_layer: Tanh; lane-dense (A, TB) store ----
    out_ref[...] = jnp.tanh(h)


# ----------------------------- wrapper ---------------------------------------
def mlp_forward(x, time, state, params):
    """x: (B, action_dim), time: (B,), state: (B, ...) -> (B, action_dim)."""
    B, action_dim = x.shape
    t_dim = params["wt1"].shape[0]
    half = t_dim // 2
    hidden_dim = params["wm2"].shape[0]

    x32 = x.astype(jnp.float32)
    state_flat = state.reshape(B, -1).astype(jnp.float32)
    state_dim = state_flat.shape[1]
    time_col = time.astype(jnp.float32).reshape(B, 1)
    d_in = action_dim + 1 + state_dim

    # --- batch tile: large to amortize per-grid-step overhead, >=2 steps when
    #     possible so the "parallel" batch axis shards across v7x's 2 TCs ---
    LANE = 128
    TB_MAX = 512
    if B <= LANE:
        TB = B                      # one small tile, no padded writeback
    else:
        TB = min(TB_MAX, max(LANE, ((B + 2 * LANE - 1) // (2 * LANE)) * LANE))
    B_pad = ((B + TB - 1) // TB) * TB

    # --- single streamed slab, batch on the lane axis: (d_in, B_pad) ---
    slab = jnp.concatenate([x32, time_col, state_flat], axis=1)   # (B, d_in)
    if B_pad != B:
        slab = jnp.pad(slab, ((0, B_pad - B), (0, 0)))
    slab_t = slab.T                                               # (d_in, B_pad)

    # --- constants: packed bias/freq column + pre-transposed weight slabs ---
    denom = max(half - 1, 1)
    freqs = jnp.exp(jnp.arange(half, dtype=jnp.float32)
                    * -(math.log(10000.0) / denom))
    cvec = jnp.concatenate([
        freqs,
        params["bt1"].reshape(-1), params["bt2"].reshape(-1),
        params["bm1"].reshape(-1), params["bm2"].reshape(-1),
        params["bm3"].reshape(-1),
    ]).reshape(-1, 1).astype(jnp.float32)

    wt1t = params["wt1"].T.astype(jnp.float32)    # (2t, t)
    wt2t = params["wt2"].T.astype(jnp.float32)    # (t, 2t)
    wm1t = params["wm1"].T.astype(jnp.float32)    # (H, A+t+S)
    wm2t = params["wm2"].T.astype(jnp.float32)    # (H, H)
    wm3t = params["wm3"].T.astype(jnp.float32)    # (A, H)
    consts = (cvec, wt1t, wt2t, wm1t, wm2t, wm3t)

    grid = (B_pad // TB,)
    in_specs = [pl.BlockSpec((d_in, TB), lambda i: (0, i))]       # streamed slab
    in_specs += [pl.BlockSpec(a.shape, lambda i: (0, 0)) for a in consts]

    out = pl.pallas_call(
        _mlp_kernel,
        out_shape=jax.ShapeDtypeStruct((action_dim, B_pad), jnp.float32),
        grid=grid,
        in_specs=in_specs,
        out_specs=pl.BlockSpec((action_dim, TB), lambda i: (0, i)),
        compiler_params=pltpu.CompilerParams(
            dimension_semantics=("parallel",),    # batch tiles shard across TCs
        ),
    )(slab_t, *consts)

    return out[:, :B].T.astype(x.dtype)           # (B, action_dim)


# ----------------------------- reference (pure JAX) --------------------------
def mlp_reference(x, time, state, params):
    def mish(v):
        return v * jnp.tanh(jax.nn.softplus(v))
    B = x.shape[0]
    t_dim = params["wt1"].shape[0]
    half = t_dim // 2
    denom = max(half - 1, 1)
    freqs = jnp.exp(jnp.arange(half, dtype=jnp.float32)
                    * -(math.log(10000.0) / denom))
    ang = time.astype(jnp.float32)[:, None] * freqs[None, :]
    emb = jnp.concatenate([jnp.sin(ang), jnp.cos(ang)], axis=-1)
    t = mish(emb @ params["wt1"] + params["bt1"]) @ params["wt2"] + params["bt2"]
    feat = jnp.concatenate([x, t, state.reshape(B, -1)], axis=1)
    h = mish(feat @ params["wm1"] + params["bm1"])
    h = mish(h @ params["wm2"] + params["bm2"])
    h = h @ params["wm3"] + params["bm3"]
    return jnp.tanh(h)


# ----------------------------- param init ------------------------------------
def init_params(key, state_dim, action_dim, hidden_dim, t_dim):
    def linear(key, fan_in, fan_out):
        kw, kb = jax.random.split(key)
        bound = 1.0 / math.sqrt(fan_in)
        w = jax.random.uniform(kw, (fan_in, fan_out), jnp.float32, -bound, bound)
        b = jax.random.uniform(kb, (1, fan_out), jnp.float32, -bound, bound)
        return w, b

    keys = jax.random.split(key, 5)
    wt1, bt1 = linear(keys[0], t_dim, 2 * t_dim)
    wt2, bt2 = linear(keys[1], 2 * t_dim, t_dim)
    in_dim = state_dim + action_dim + t_dim
    wm1, bm1 = linear(keys[2], in_dim, hidden_dim)
    wm2, bm2 = linear(keys[3], hidden_dim, hidden_dim)
    wm3, bm3 = linear(keys[4], hidden_dim, action_dim)
    return dict(wt1=wt1, bt1=bt1, wt2=wt2, bt2=bt2,
                wm1=wm1, bm1=bm1, wm2=wm2, bm2=bm2, wm3=wm3, bm3=bm3)


# ----------------------------- main -------------------------------------------
if __name__ == "__main__":
    B, state_dim, action_dim, hidden_dim, t_dim = 8, 16, 4, 32, 16

    key = jax.random.PRNGKey(0)
    k_x, k_t, k_s, k_p = jax.random.split(key, 4)
    x = jax.random.normal(k_x, (B, action_dim), jnp.float32)
    time = jax.random.uniform(k_t, (B,), jnp.float32, 0.0, 100.0)
    state = jax.random.normal(k_s, (B, state_dim), jnp.float32)
    params = init_params(k_p, state_dim, action_dim, hidden_dim, t_dim)

    out = jax.block_until_ready(mlp_forward(x, time, state, params))
    ref = jax.block_until_ready(mlp_reference(x, time, state, params))

    assert out.shape == (B, action_dim)
    # Tolerance accounts for the approx reciprocal in mish and the default
    # (multi-pass bf16) MXU precision of f32 matmuls.
    assert jnp.allclose(out, ref, atol=5e-3, rtol=5e-3), "mismatch vs reference"

    print("KERNEL_OK")
</pallas_src>

<mosaic_0001>
module attributes {stable_mosaic.version = 11 : i64} {
  func.func @_mlp_kernel(%arg0: i32, %arg1: memref<21x8xf32, #tpu.memory_space<vmem>>, %arg2: memref<124x1xf32, #tpu.memory_space<vmem>>, %arg3: memref<32x16xf32, #tpu.memory_space<vmem>>, %arg4: memref<16x32xf32, #tpu.memory_space<vmem>>, %arg5: memref<32x36xf32, #tpu.memory_space<vmem>>, %arg6: memref<32x32xf32, #tpu.memory_space<vmem>>, %arg7: memref<4x32xf32, #tpu.memory_space<vmem>>, %arg8: memref<4x8xf32, #tpu.memory_space<vmem>>) attributes {dimension_semantics = [#tpu.dimension_semantics<parallel>], iteration_bounds = array<i64: 1>, scalar_prefetch = 0 : i64, scratch_operands = 0 : i64, tpu.core_type = #tpu.core_type<tc>, window_params = [{transform_indices = @transform_0, window_bounds = array<i64: 21, 8>}, {pipeline_mode = #tpu.pipeline_mode<synchronous>, transform_indices = @transform_1, window_bounds = array<i64: 124, 1>}, {pipeline_mode = #tpu.pipeline_mode<synchronous>, transform_indices = @transform_2, window_bounds = array<i64: 32, 16>}, {pipeline_mode = #tpu.pipeline_mode<synchronous>, transform_indices = @transform_3, window_bounds = array<i64: 16, 32>}, {pipeline_mode = #tpu.pipeline_mode<synchronous>, transform_indices = @transform_4, window_bounds = array<i64: 32, 36>}, {pipeline_mode = #tpu.pipeline_mode<synchronous>, transform_indices = @transform_5, window_bounds = array<i64: 32, 32>}, {pipeline_mode = #tpu.pipeline_mode<synchronous>, transform_indices = @transform_6, window_bounds = array<i64: 4, 32>}, {transform_indices = @transform_7, window_bounds = array<i64: 4, 8>}]} {
    %c0 = arith.constant 0 : index
    %c0_0 = arith.constant 0 : index
    %0 = vector.load %arg1[%c0, %c0_0] : memref<21x8xf32, #tpu.memory_space<vmem>>, vector<4x8xf32>
    %c4 = arith.constant 4 : index
    %c0_1 = arith.constant 0 : index
    %1 = vector.load %arg1[%c4, %c0_1] : memref<21x8xf32, #tpu.memory_space<vmem>>, vector<1x8xf32>
    %c5 = arith.constant 5 : index
    %c0_2 = arith.constant 0 : index
    %2 = vector.load %arg1[%c5, %c0_2] : memref<21x8xf32, #tpu.memory_space<vmem>>, vector<16x8xf32>
    %c0_3 = arith.constant 0 : index
    %c0_4 = arith.constant 0 : index
    %3 = vector.load %arg2[%c0_3, %c0_4] : memref<124x1xf32, #tpu.memory_space<vmem>>, vector<8x1xf32>
    %c8 = arith.constant 8 : index
    %c0_5 = arith.constant 0 : index
    %4 = vector.load %arg2[%c8, %c0_5] : memref<124x1xf32, #tpu.memory_space<vmem>>, vector<32x1xf32>
    %c40 = arith.constant 40 : index
    %c0_6 = arith.constant 0 : index
    %5 = vector.load %arg2[%c40, %c0_6] : memref<124x1xf32, #tpu.memory_space<vmem>>, vector<16x1xf32>
    %c56 = arith.constant 56 : index
    %c0_7 = arith.constant 0 : index
    %6 = vector.load %arg2[%c56, %c0_7] : memref<124x1xf32, #tpu.memory_space<vmem>>, vector<32x1xf32>
    %c88 = arith.constant 88 : index
    %c0_8 = arith.constant 0 : index
    %7 = vector.load %arg2[%c88, %c0_8] : memref<124x1xf32, #tpu.memory_space<vmem>>, vector<32x1xf32>
    %c120 = arith.constant 120 : index
    %c0_9 = arith.constant 0 : index
    %8 = vector.load %arg2[%c120, %c0_9] : memref<124x1xf32, #tpu.memory_space<vmem>>, vector<4x1xf32>
    %9 = vector.broadcast %3 : vector<8x1xf32> to vector<8x8xf32>
    %10 = vector.broadcast %1 : vector<1x8xf32> to vector<8x8xf32>
    %11 = arith.mulf %9, %10 : vector<8x8xf32>
    %12 = math.sin %11 : vector<8x8xf32>
    %13 = math.cos %11 : vector<8x8xf32>
    %c0_10 = arith.constant 0 : index
    %c0_11 = arith.constant 0 : index
    %14 = vector.load %arg3[%c0_10, %c0_11] : memref<32x16xf32, #tpu.memory_space<vmem>>, vector<32x16xf32>
    %15 = vector.extract_strided_slice %14 {offsets = [0, 0], sizes = [32, 8], strides = [1, 1]} : vector<32x16xf32> to vector<32x8xf32>
    %cst = arith.constant dense<0.000000e+00> : vector<32x8xf32>
    %16 = tpu.matmul %15, %12, %cst {dimension_numbers = #tpu.dot_dimension_numbers<[1], [0], [0], [1], [0, 0, 1, 1], [], []>} : vector<32x8xf32>, vector<8x8xf32>, vector<32x8xf32> -> vector<32x8xf32>
    %17 = vector.extract_strided_slice %14 {offsets = [0, 8], sizes = [32, 8], strides = [1, 1]} : vector<32x16xf32> to vector<32x8xf32>
    %cst_12 = arith.constant dense<0.000000e+00> : vector<32x8xf32>
    %18 = tpu.matmul %17, %13, %cst_12 {dimension_numbers = #tpu.dot_dimension_numbers<[1], [0], [0], [1], [0, 0, 1, 1], [], []>} : vector<32x8xf32>, vector<8x8xf32>, vector<32x8xf32> -> vector<32x8xf32>
    %19 = arith.addf %16, %18 : vector<32x8xf32>
    %20 = vector.broadcast %4 : vector<32x1xf32> to vector<32x8xf32>
    %21 = arith.addf %19, %20 : vector<32x8xf32>
    %cst_13 = arith.constant 2.000000e+01 : f32
    %22 = vector.broadcast %cst_13 : f32 to vector<32x8xf32>
    %23 = arith.minimumf %21, %22 : vector<32x8xf32>
    %24 = math.exp %23 : vector<32x8xf32>
    %cst_14 = arith.constant 2.000000e+00 : f32
    %25 = vector.broadcast %cst_14 : f32 to vector<32x8xf32>
    %26 = arith.addf %24, %25 : vector<32x8xf32>
    %27 = arith.mulf %24, %26 : vector<32x8xf32>
    %cst_15 = arith.constant 2.000000e+01 : f32
    %28 = vector.broadcast %cst_15 : f32 to vector<32x8xf32>
    %29 = arith.cmpf ogt, %21, %28 : vector<32x8xf32>
    %30 = arith.mulf %21, %27 : vector<32x8xf32>
    %cst_16 = arith.constant 2.000000e+00 : f32
    %31 = vector.broadcast %cst_16 : f32 to vector<32x8xf32>
    %32 = arith.addf %27, %31 : vector<32x8xf32>
    %33 = tpu.reciprocal %32 {approx = true} : vector<32x8xf32> -> vector<32x8xf32>
    %34 = arith.mulf %30, %33 : vector<32x8xf32>
    %35 = arith.select %29, %21, %34 : vector<32x8xi1>, vector<32x8xf32>
    %c0_17 = arith.constant 0 : index
    %c0_18 = arith.constant 0 : index
    %36 = vector.load %arg4[%c0_17, %c0_18] : memref<16x32xf32, #tpu.memory_space<vmem>>, vector<16x32xf32>
    %cst_19 = arith.constant dense<0.000000e+00> : vector<16x8xf32>
    %37 = tpu.matmul %36, %35, %cst_19 {dimension_numbers = #tpu.dot_dimension_numbers<[1], [0], [0], [1], [0, 0, 1, 1], [], []>} : vector<16x32xf32>, vector<32x8xf32>, vector<16x8xf32> -> vector<16x8xf32>
    %38 = vector.broadcast %5 : vector<16x1xf32> to vector<16x8xf32>
    %39 = arith.addf %37, %38 : vector<16x8xf32>
    %c0_20 = arith.constant 0 : index
    %c0_21 = arith.constant 0 : index
    %40 = vector.load %arg5[%c0_20, %c0_21] : memref<32x36xf32, #tpu.memory_space<vmem>>, vector<32x36xf32>
    %41 = vector.extract_strided_slice %40 {offsets = [0, 0], sizes = [32, 4], strides = [1, 1]} : vector<32x36xf32> to vector<32x4xf32>
    %cst_22 = arith.constant dense<0.000000e+00> : vector<32x8xf32>
    %42 = tpu.matmul %41, %0, %cst_22 {dimension_numbers = #tpu.dot_dimension_numbers<[1], [0], [0], [1], [0, 0, 1, 1], [], []>} : vector<32x4xf32>, vector<4x8xf32>, vector<32x8xf32> -> vector<32x8xf32>
    %43 = vector.extract_strided_slice %40 {offsets = [0, 4], sizes = [32, 16], strides = [1, 1]} : vector<32x36xf32> to vector<32x16xf32>
    %cst_23 = arith.constant dense<0.000000e+00> : vector<32x8xf32>
    %44 = tpu.matmul %43, %39, %cst_23 {dimension_numbers = #tpu.dot_dimension_numbers<[1], [0], [0], [1], [0, 0, 1, 1], [], []>} : vector<32x16xf32>, vector<16x8xf32>, vector<32x8xf32> -> vector<32x8xf32>
    %45 = arith.addf %42, %44 : vector<32x8xf32>
    %46 = vector.extract_strided_slice %40 {offsets = [0, 20], sizes = [32, 16], strides = [1, 1]} : vector<32x36xf32> to vector<32x16xf32>
    %cst_24 = arith.constant dense<0.000000e+00> : vector<32x8xf32>
    %47 = tpu.matmul %46, %2, %cst_24 {dimension_numbers = #tpu.dot_dimension_numbers<[1], [0], [0], [1], [0, 0, 1, 1], [], []>} : vector<32x16xf32>, vector<16x8xf32>, vector<32x8xf32> -> vector<32x8xf32>
    %48 = arith.addf %45, %47 : vector<32x8xf32>
    %49 = vector.broadcast %6 : vector<32x1xf32> to vector<32x8xf32>
    %50 = arith.addf %48, %49 : vector<32x8xf32>
    %cst_25 = arith.constant 2.000000e+01 : f32
    %51 = vector.broadcast %cst_25 : f32 to vector<32x8xf32>
    %52 = arith.minimumf %50, %51 : vector<32x8xf32>
    %53 = math.exp %52 : vector<32x8xf32>
    %cst_26 = arith.constant 2.000000e+00 : f32
    %54 = vector.broadcast %cst_26 : f32 to vector<32x8xf32>
    %55 = arith.addf %53, %54 : vector<32x8xf32>
    %56 = arith.mulf %53, %55 : vector<32x8xf32>
    %cst_27 = arith.constant 2.000000e+01 : f32
    %57 = vector.broadcast %cst_27 : f32 to vector<32x8xf32>
    %58 = arith.cmpf ogt, %50, %57 : vector<32x8xf32>
    %59 = arith.mulf %50, %56 : vector<32x8xf32>
    %cst_28 = arith.constant 2.000000e+00 : f32
    %60 = vector.broadcast %cst_28 : f32 to vector<32x8xf32>
    %61 = arith.addf %56, %60 : vector<32x8xf32>
    %62 = tpu.reciprocal %61 {approx = true} : vector<32x8xf32> -> vector<32x8xf32>
    %63 = arith.mulf %59, %62 : vector<32x8xf32>
    %64 = arith.select %58, %50, %63 : vector<32x8xi1>, vector<32x8xf32>
    %c0_29 = arith.constant 0 : index
    %c0_30 = arith.constant 0 : index
    %65 = vector.load %arg6[%c0_29, %c0_30] : memref<32x32xf32, #tpu.memory_space<vmem>>, vector<32x32xf32>
    %cst_31 = arith.constant dense<0.000000e+00> : vector<32x8xf32>
    %66 = tpu.matmul %65, %64, %cst_31 {dimension_numbers = #tpu.dot_dimension_numbers<[1], [0], [0], [1], [0, 0, 1, 1], [], []>} : vector<32x32xf32>, vector<32x8xf32>, vector<32x8xf32> -> vector<32x8xf32>
    %67 = vector.broadcast %7 : vector<32x1xf32> to vector<32x8xf32>
    %68 = arith.addf %66, %67 : vector<32x8xf32>
    %cst_32 = arith.constant 2.000000e+01 : f32
    %69 = vector.broadcast %cst_32 : f32 to vector<32x8xf32>
    %70 = arith.minimumf %68, %69 : vector<32x8xf32>
    %71 = math.exp %70 : vector<32x8xf32>
    %cst_33 = arith.constant 2.000000e+00 : f32
    %72 = vector.broadcast %cst_33 : f32 to vector<32x8xf32>
    %73 = arith.addf %71, %72 : vector<32x8xf32>
    %74 = arith.mulf %71, %73 : vector<32x8xf32>
    %cst_34 = arith.constant 2.000000e+01 : f32
    %75 = vector.broadcast %cst_34 : f32 to vector<32x8xf32>
    %76 = arith.cmpf ogt, %68, %75 : vector<32x8xf32>
    %77 = arith.mulf %68, %74 : vector<32x8xf32>
    %cst_35 = arith.constant 2.000000e+00 : f32
    %78 = vector.broadcast %cst_35 : f32 to vector<32x8xf32>
    %79 = arith.addf %74, %78 : vector<32x8xf32>
    %80 = tpu.reciprocal %79 {approx = true} : vector<32x8xf32> -> vector<32x8xf32>
    %81 = arith.mulf %77, %80 : vector<32x8xf32>
    %82 = arith.select %76, %68, %81 : vector<32x8xi1>, vector<32x8xf32>
    %c0_36 = arith.constant 0 : index
    %c0_37 = arith.constant 0 : index
    %83 = vector.load %arg7[%c0_36, %c0_37] : memref<4x32xf32, #tpu.memory_space<vmem>>, vector<4x32xf32>
    %cst_38 = arith.constant dense<0.000000e+00> : vector<4x8xf32>
    %84 = tpu.matmul %83, %82, %cst_38 {dimension_numbers = #tpu.dot_dimension_numbers<[1], [0], [0], [1], [0, 0, 1, 1], [], []>} : vector<4x32xf32>, vector<32x8xf32>, vector<4x8xf32> -> vector<4x8xf32>
    %85 = vector.broadcast %8 : vector<4x1xf32> to vector<4x8xf32>
    %86 = arith.addf %84, %85 : vector<4x8xf32>
    %87 = math.tanh %86 : vector<4x8xf32>
    %c0_39 = arith.constant 0 : index
    %c0_40 = arith.constant 0 : index
    %88 = vector.load %arg8[%c0_39, %c0_40] : memref<4x8xf32, #tpu.memory_space<vmem>>, vector<4x8xf32>
    tpu.vector_store %arg8[%c0_39, %c0_40], %87 {strides = array<i32>} : memref<4x8xf32, #tpu.memory_space<vmem>>, vector<4x8xf32>,
    return
  }
  func.func @transform_0(%arg0: i32) -> (i32, i32) {
    %c0_i32 = arith.constant 0 : i32
    %c0_i32_0 = arith.constant 0 : i32
    return %c0_i32, %arg0 : i32, i32
  }
  func.func @transform_1(%arg0: i32) -> (i32, i32) {
    %c0_i32 = arith.constant 0 : i32
    %c0_i32_0 = arith.constant 0 : i32
    %c0_i32_1 = arith.constant 0 : i32
    return %c0_i32, %c0_i32_0 : i32, i32
  }
  func.func @transform_2(%arg0: i32) -> (i32, i32) {
    %c0_i32 = arith.constant 0 : i32
    %c0_i32_0 = arith.constant 0 : i32
    %c0_i32_1 = arith.constant 0 : i32
    return %c0_i32, %c0_i32_0 : i32, i32
  }
  func.func @transform_3(%arg0: i32) -> (i32, i32) {
    %c0_i32 = arith.constant 0 : i32
    %c0_i32_0 = arith.constant 0 : i32
    %c0_i32_1 = arith.constant 0 : i32
    return %c0_i32, %c0_i32_0 : i32, i32
  }
  func.func @transform_4(%arg0: i32) -> (i32, i32) {
    %c0_i32 = arith.constant 0 : i32
    %c0_i32_0 = arith.constant 0 : i32
    %c0_i32_1 = arith.constant 0 : i32
    return %c0_i32, %c0_i32_0 : i32, i32
  }
  func.func @transform_5(%arg0: i32) -> (i32, i32) {
    %c0_i32 = arith.constant 0 : i32
    %c0_i32_0 = arith.constant 0 : i32
    %c0_i32_1 = arith.constant 0 : i32
    return %c0_i32, %c0_i32_0 : i32, i32
  }
  func.func @transform_6(%arg0: i32) -> (i32, i32) {
    %c0_i32 = arith.constant 0 : i32
    %c0_i32_0 = arith.constant 0 : i32
    %c0_i32_1 = arith.constant 0 : i32
    return %c0_i32, %c0_i32_0 : i32, i32
  }
  func.func @transform_7(%arg0: i32) -> (i32, i32) {
    %c0_i32 = arith.constant 0 : i32
    %c0_i32_0 = arith.constant 0 : i32
    return %c0_i32, %arg0 : i32, i32
  }
}

</mosaic_0001>

<bundles_post_ra>
// kernel: tpu_custom_call.1
= control target key start
LH: loop header
LB: loop body
LE: loop exit
PB: predicated region body
PF: predicated region fallthrough
CT: control target
= control target key end

     0   :  { %v1574_v1 = vmov 0   ;;  %s1575_s30 = smov 120   ;;  %s1827_s0 = inlined_call_operand.vmem [shape: f32[21,8], index: 0, kind: input, shape index: {}]   ;;  %s1828_s1 = inlined_call_operand.vmem [shape: f32[124,1], index: 1, kind: input, shape index: {}]   ;;  %s1829_s2 = inlined_call_operand.vmem [shape: f32[32,16], index: 2, kind: input, shape index: {}]   ;;  %s1830_s3 = inlined_call_operand.vmem [shape: f32[16,32], index: 3, kind: input, shape index: {}]   ;;  %s1831_s4 = inlined_call_operand.vmem [shape: f32[32,36], index: 4, kind: input, shape index: {}]   ;;  %s1832_s5 = inlined_call_operand.vmem [shape: f32[32,32], index: 5, kind: input, shape index: {}]   ;;  %s1833_s6 = inlined_call_operand.vmem [shape: f32[4,32], index: 6, kind: input, shape index: {}]   ;;  %s1834_s7 = inlined_call_operand.hbm [shape: f32[4,8], index: 7, kind: output, shape index: {}]  }
   0x1   :  { %v31_v0 = vld [vmem:[%s1828_s1] sm:$0xff]  ;;  %1494 = vset.pattern.permute.xlu0 %v1574_v1  ;;  %1495 = vset.pattern.permute.xlu1 %v1574_v1  ;;  %v1639_v3 = vld [vmem:[%s1829_s2 + $0x8] sm:$0xff] }
   0x2   :  { %49 = vperm.xlu0 %1494, %v31_v0   ;;  %v1634_v2 = vld [vmem:[%s1829_s2] sm:$0xff]  ;;  %274 = vrot.lane.b32.xlu1 %v1639_v3, %s1575_s30 }
   0x3   :  { %12 = vsyncpa [#allocation3], 0  ;;  %v1646_v4 = vld [vmem:[%s1829_s2 + $0x10] sm:$0xff]  ;;  %v1651_v5 = vld [vmem:[%s1829_s2 + $0x18] sm:$0xff]  ;;  %s1576_s19 = smov 124   ;;  %s1577_s22 = smov 108  }
   0x4   :  { %v33_v6 = vld [vmem:[%s1828_s1 + $0x10] sm:$0xff]  ;;  %v35_v7 = vld [vmem:[%s1828_s1 + $0x20] sm:$0xff]  ;;  %v1667_v9 = vld [vmem:[%s1831_s4 + $0x8] sm:$0xff]  ;;  %vm280_vm0 = vcmask 64512   ;;  %v1578_v40 = vmov 2102212464  }
   0x5   :  { %v37_v8 = vld [vmem:[%s1828_s1 + $0x30] sm:$0xff]  ;;  %v1673_v10 = vld [vmem:[%s1831_s4 + $0x18] sm:$0xff]  ;;  %v39_v11 = vld [vmem:[%s1828_s1 + $0x40] sm:$0xff]  ;;  %v1579_v42 = vmov 920167782   ;;  %s1587_s21 = smov [#allocation2]  }
   0x6   :  { %272 = vrot.lane.b32.xlu0 %v1634_v2, %s1575_s30  ;;  %276 = vrot.lane.b32.xlu1 %v1646_v4, %s1575_s30  ;;  %v41_v12 = vld [vmem:[%s1828_s1 + $0x50] sm:$0xff]  ;;  %v43_v13 = vld [vmem:[%s1828_s1 + $0x60] sm:$0xff]  ;;  %v1580_v46 = vmov 1326507024   ;;  %v1581_v48 = vmov 683565275  }
   0x7   :  { %v45_v14 = vld [vmem:[%s1828_s1 + $0x70] sm:$0xff]  ;;  %v32_v15 = vld [vmem:[%s1828_s1 + $0x8] sm:$0xff]  ;;  %v34_v16 = vld [vmem:[%s1828_s1 + $0x18] sm:$0xff]  ;;  %v1582_v50 = vmov 2475754826   ;;  %s1263_s23 = sshll.u32 %s1587_s21, 4  ;;  %s1264_s23 = int_to_ptr.vmem [resolvable:$true] %s1263_s23 }
   0x8   :  { %v36_v17 = vld [vmem:[%s1828_s1 + $0x28] sm:$0xff]  ;;  %v1702_v18 = vld [vmem:[%s1831_s4] sm:$0xff]  ;;  %v1708_v19 = vld [vmem:[%s1831_s4 + $0x10] sm:$0xff]  ;;  %v1583_v53 = vmov 2131351028   ;;  %s1550_s24 = scalar_lea.vmem %s1264_s23, 64  ;;  %p1555_p1 = scmp.lt.s32.totalorder %s1264_s23, %s1264_s23 }
   0x9   :  { %v38_v20 = vld [vmem:[%s1828_s1 + $0x38] sm:$0xff]  ;;  %v1271_v21 = vld [vmem:[%s1827_s0 + $0x4] ss:$0 sm:$0xff]  ;;  %v40_v23 = vld [vmem:[%s1828_s1 + $0x48] sm:$0xff]  ;;  %p1551_p0 = scmp.ne.s32.totalorder %s1264_s23, %s1550_s24  ;;  %p1556_p2 = scmp.lt.s32.totalorder %s1550_s24, %s1550_s24 }
   0xa   :  { %278 = vrot.lane.b32.xlu0 %v1651_v5, %s1575_s30  ;;  %469 = vperm.xlu1 %1495, %v32_v15   ;;  %v42_v28 = vld [vmem:[%s1828_s1 + $0x58] sm:$0xff]  ;;  %v44_v32 = vld [vmem:[%s1828_s1 + $0x68] sm:$0xff] }
   0xb   :  { %v46_v36 = vld [vmem:[%s1828_s1 + $0x78] sm:$0xf]  ;;  %p1557_p3 = por %p1556_p2, %p1555_p1 }
   0xd   :  { %p1558_p4 = pnand %p1557_p3, %p1551_p0 }
   0xe   :  { %474 = vperm.xlu0 %1494, %v33_v6   ;;  %479 = vperm.xlu1 %1495, %v34_v16  }
  0x12   :  { %484 = vperm.xlu0 %1494, %v35_v7   ;;  %539 = vperm.xlu1 %1495, %v36_v17  }
  0x16   :  { %544 = vperm.xlu0 %1494, %v37_v8   ;;  %637 = vrot.lane.b32.xlu1 %v1702_v18, %s1576_s19 }
  0x1a   :  { %639 = vrot.lane.b32.xlu0 %v1667_v9, %s1576_s19  ;;  %641 = vrot.lane.b32.xlu1 %v1708_v19, %s1576_s19 }
  0x1e   :  { %643 = vrot.lane.b32.xlu0 %v1673_v10, %s1576_s19  ;;  %837 = vrot.lane.b32.xlu1 %v1702_v18, %s1577_s22 }
  0x22   :  { %839 = vrot.lane.b32.xlu0 %v1667_v9, %s1577_s22  ;;  %841 = vrot.lane.b32.xlu1 %v1708_v19, %s1577_s22 }
  0x26   :  { %843 = vrot.lane.b32.xlu0 %v1673_v10, %s1577_s22  ;;  %944 = vperm.xlu1 %1495, %v38_v20  }
  0x2a   :  { %949 = vperm.xlu0 %1494, %v39_v11   ;;  %954 = vperm.xlu1 %1495, %v40_v23  }
  0x2e   :  { %959 = vperm.xlu0 %1494, %v41_v12   ;;  %1016 = vperm.xlu1 %1495, %v42_v28  }
  0x32   :  { %1021 = vperm.xlu0 %1494, %v43_v13   ;;  %1026 = vperm.xlu1 %1495, %v44_v32  }
  0x36   :  { %1031 = vperm.xlu0 %1494, %v45_v14   ;;  %1178 = vperm.xlu1 %1495, %v46_v36  }
  0x81   :  { %v50_v22 = vpop.permute.xlu0 %49 }
  0x82   :  { %v1722_v24 = vmul.f32 %v1271_v21, %v50_v22 }
  0x84   :  { %v60_v25 = vand.u32 2139095040, %v1722_v24  ;;  %v57_v27 = vand.u32 2147483647, %v1722_v24  ;;  %vm59_vm8 = vcmp.lt.s32.totalorder %v1722_v24, 0 }
  0x85   :  { %v273_v26 = vpop.permute.xlu0 %272 }
  0x86   :  { %v61_v29 = vshrl.u32 %v60_v25, 23  ;;  %1356 = vmatprep.mubr.msk.f32.mxu0 %vm280_vm0, %v273_v26  ;;  %v64_v31 = vand.u32 8388607, %v57_v27  ;;  %vm58_vm9 = vcmp.le.f32.partialorder %v57_v27, 0.7853982 }
  0x88   :  { %v1272_v30 = vadd.s32 4294967169, %v61_v29  ;;  %v65_v35 = vor.u32 8388608, %v64_v31 }
  0x8a   :  { %v67_v33 = vadd.s32 1, %v1272_v30  ;;  %v105_v44 = vshll.u32 %v65_v35, 8 }
  0x8c   :  { %vm68_vm1 = vcmp.gt.s32.totalorder %v67_v33, 0 }
  0x8d   :  { %v69_v34 = vsel %vm68_vm1, %v67_v33, 0  ;;  %vm149_vm1 = vweird.f32 %v1722_v24 }
  0x8e   :  { %v71_v37 = vand.u32 31, %v69_v34  ;;  %v70_v38 = vshrl.u32 %v69_v34, 5 }
  0x90   :  { %v72_v39 = vsub.s32 32, %v71_v37  ;;  %v83_v41 = vshll.u32 %v1578_v40, %v71_v37  ;;  %v86_v43 = vshll.u32 %v1579_v42, %v71_v37  ;;  %v74_v49 = vshll.u32 %v1581_v48, %v71_v37 }
  0x91   :  { %v77_v52 = vshll.u32 %v1582_v50, %v71_v37  ;;  %v80_v55 = vshll.u32 %v1583_v53, %v71_v37  ;;  %vm92_vm2 = vcmp.lt.s32.totalorder %v70_v38, 4  ;;  %vm89_vm3 = vcmp.lt.s32.totalorder %v70_v38, 1 }
  0x92   :  { %v84_v45 = vshrl.u32 %v1579_v42, %v72_v39  ;;  %v87_v47 = vshrl.u32 %v1580_v46, %v72_v39  ;;  %v75_v51 = vshrl.u32 %v1582_v50, %v72_v39  ;;  %v78_v54 = vshrl.u32 %v1583_v53, %v72_v39 }
  0x93   :  { %v81_v56 = vshrl.u32 %v1578_v40, %v72_v39  ;;  %v73_v60 = vshrl.u32 %v1581_v48, %v72_v39  ;;  %vm90_vm4 = vcmp.lt.s32.totalorder %v70_v38, 2  ;;  %vm91_vm5 = vcmp.lt.s32.totalorder %v70_v38, 3 }
  0x94   :  { %v85_v57 = vor.u32 %v84_v45, %v83_v41  ;;  %v88_v58 = vor.u32 %v87_v47, %v86_v43  ;;  %v76_v59 = vor.u32 %v75_v51, %v74_v49  ;;  %v79_v61 = vor.u32 %v78_v54, %v77_v52 }
  0x95   :  { %v82_v62 = vor.u32 %v81_v56, %v80_v55 }
  0x96   :  { %v98_v63 = vsel %vm92_vm2, %v85_v57, 920167782  ;;  %v102_v0 = vsel %vm92_vm2, %v88_v58, 1326507024  ;;  %v97_v6 = vsel %vm89_vm3, %v76_v59, %v79_v61  ;;  %v93_v11 = vsel %vm89_vm3, %v73_v60, %v76_v59 }
  0x97   :  { %v94_v1 = vsel %vm92_vm2, %v82_v62, 2102212464  ;;  %v99_v7 = vsel %vm91_vm5, %v82_v62, %v98_v63  ;;  %v101_v8 = vsel %vm89_vm3, %v79_v61, %v82_v62  ;;  %v103_v14 = vsel %vm91_vm5, %v85_v57, %v102_v0 }
  0x98   :  { %v95_v12 = vsel %vm91_vm5, %v79_v61, %v94_v1  ;;  %v100_v13 = vsel %vm90_vm4, %v97_v6, %v99_v7  ;;  %v104_v15 = vsel %vm90_vm4, %v101_v8, %v103_v14  ;;  %v275_v61 = vpop.permute.xlu1 %274  ;;  %v279_v14 = vpop.permute.xlu0 %278  ;;  %vm547_vm2 = vcmask 261120  }
  0x99   :  { %v1738_v16 = vmul.u32.u64.low %v105_v44, %v100_v13  ;;  %v1739_v17 = vmul.u32.u64.high %v105_v44, %v100_v13, %v1738_v16  ;;  %v1741_v20 = vmul.u32.u64.low %v105_v44, %v104_v15  ;;  %v1742_v21 = vmul.u32.u64.high %v105_v44, %v104_v15, %v1741_v20 }
  0x9a   :  { %v96_v22 = vsel %vm90_vm4, %v93_v11, %v95_v12 }
  0x9b   :  { %v115_v23 = vadd.s32 1, %v1739_v17  ;;  %v112_v25 = vmul.u32 %v105_v44, %v96_v22  ;;  %vm114_vm6 = vc.u32 %v1742_v21, %v1738_v16  ;;  %v113_v38 = vadd.s32 %v1738_v16, %v1742_v21 }
  0x9c   :  { %v277_v12 = vpop.permute.xlu1 %276  ;;  %v475_v15 = vpop.permute.xlu0 %474 }
  0x9d   :  { %v116_v26 = vsel %vm114_vm6, %v115_v23, %v1739_v17  ;;  %vm645_vm6 = vcmask 130048  }
  0x9e   :  { %v117_v28 = vadd.s32 %v116_v26, %v112_v25 }
  0xa0   :  { %v118_v29 = vadd.s32 536870912, %v117_v28  ;;  %v470_v16 = vpop.permute.xlu1 %469  ;;  %v485_v22 = vpop.permute.xlu0 %484 }
  0xa2   :  { %v119_v30 = vshrl.u32 %v118_v29, 30 }
  0xa4   :  { %v120_v31 = vshll.u32 %v119_v30, 30  ;;  %v143_v50 = vsub.s32 4, %v119_v30  ;;  %v480_v25 = vpop.permute.xlu1 %479 }
  0xa6   :  { %v121_v32 = vsub.s32 %v117_v28, %v120_v31  ;;  %v144_v53 = vsel %vm59_vm8, %v143_v50, %v119_v30 }
  0xa7   :  { %v146_v55 = vsel %vm58_vm9, 0, %v144_v53 }
  0xa8   :  { %v123_v33 = vsub.s32 0, %v121_v32  ;;  %v150_v56 = vadd.s32 3, %v146_v55  ;;  %v254_v57 = vand.u32 3, %v146_v55 }
  0xaa   :  { %v1273_v34 = vmin.u32 %v123_v33, %v121_v32  ;;  %v151_v58 = vand.u32 3, %v150_v56  ;;  %vm259_vm10 = vcmp.eq.s32.totalorder %v254_v57, 2  ;;  %vm256_vm12 = vcmp.eq.s32.totalorder %v254_v57, 0 }
  0xab   :  { %vm255_vm14 = vcmp.lt.s32.totalorder %v254_v57, 2 }
  0xac   :  { %v125_v35 = vclz %v1273_v34  ;;  %vm156_vm11 = vcmp.eq.s32.totalorder %v151_v58, 2  ;;  %vm153_vm13 = vcmp.eq.s32.totalorder %v151_v58, 0  ;;  %vm152_vm15 = vcmp.lt.s32.totalorder %v151_v58, 2 }
  0xae   :  { %v1274_v36 = vadd.s32 4294967294, %v125_v35 }
  0xb0   :  { %vm1275_vm7 = vcmp.lt.s32.totalorder %v1274_v36, 0 }
  0xb1   :  { %v128_v37 = vsel %vm1275_vm7, 0, %v1274_v36  ;;  %vm748_vm7 = vcmask 1043456  }
  0xb2   :  { %v129_v39 = vsub.s32 32, %v128_v37  ;;  %v133_v40 = vsub.s32 4294967266, %v128_v37  ;;  %v130_v41 = vshll.u32 %v121_v32, %v128_v37 }
  0xb4   :  { %v131_v42 = vshrl.u32 %v113_v38, %v129_v39  ;;  %v134_v43 = vadd.s32 127, %v133_v40 }
  0xb6   :  { %v132_v44 = vor.u32 %v131_v42, %v130_v41  ;;  %v135_v45 = vshll.u32 %v134_v43, 23 }
  0xb8   :  { %v136_v46 = vor.u32 4788187, %v135_v45  ;;  %v139_v48 = vcvt.s32.f32 %v132_v44 }
  0xba   :  { %v137_v47 = vand.u32 2147483647, %v136_v46 }
  0xbc   :  { %v140_v49 = vmul.f32 %v139_v48, %v137_v47 }
  0xbe   :  { %v141_v51 = vxor.u32 2147483648, %v140_v49 }
  0xc0   :  { %v142_v52 = vsel %vm59_vm8, %v141_v51, %v140_v49  ;;  %vm739_vm8 = vcmask 31744  }
  0xc1   :  { %v145_v54 = vsel %vm58_vm9, %v1722_v24, %v142_v52  ;;  %v535_v24 = vld [vmem:[%s1830_s3] sm:$0xff] }
  0xc2   :  { %1496 = vcosq.f32 %v145_v54  ;;  %1378 = vmatprep.mubr.msk.f32.mxu1 %vm547_vm2, %v535_v24 }
  0xc3   :  { %1498 = vsinq.f32 %v145_v54 }
  0xcc   :  { %v1497_v59 = vpop.eup %1496 }
  0xcd   :  { %v1499_v60 = vpop.eup %1498  ;;  %v157_v62 = vxor.u32 2147483648, %v1497_v59 }
  0xce   :  { %v154_v63 = vxor.u32 2147483648, %v1499_v60 }
  0xcf   :  { %v261_v0 = vsel %vm259_vm10, %v157_v62, %v1499_v60  ;;  %v158_v27 = vsel %vm156_vm11, %v157_v62, %v1499_v60 }
  0xd0   :  { %v258_v1 = vsel %vm256_vm12, %v1497_v59, %v154_v63  ;;  %v155_v6 = vsel %vm153_vm13, %v1497_v59, %v154_v63  ;;  %vm1585_vm13 = vmmov 0  }
  0xd1   :  { %v262_v7 = vsel %vm255_vm14, %v258_v1, %v261_v0  ;;  %v159_v8 = vsel %vm152_vm15, %v155_v6, %v158_v27 }
  0xd2   :  { %v263_v11 = vsel %vm149_vm1, nan, %v262_v7  ;;  %v160_v13 = vsel %vm149_vm1, nan, %v159_v8  ;;  %v536_v8 = vld [vmem:[%s1830_s3 + $0x8] sm:$0xff] }
  0xd3   :  { %1354 = vmatprep.subr.mxu0 %v263_v11 }
  0xd4   :  { %1355 = vmatpush3.msra.mxu0 %v263_v11  ;;  %v540_v11 = vpop.permute.xlu1 %539 }
  0xd5   :  { %1357 = vmatmul.mubr.msk.f32.vlgmr.msra.gmra.mrb[0].mxu0 %vm280_vm0, %v275_v61  ;;  %1362 = vmatprep.subr.mxu0 %v160_v13 }
  0xd6   :  { %1363 = vmatpush3.msra.mxu0 %v160_v13  ;;  %1359 = vmatprep.mubr.msk.f32.mxu0 %vm280_vm0, %v277_v12  ;;  %v545_v13 = vpop.permute.xlu0 %544 }
  0xd8   :  { %v638_v12 = vpop.permute.xlu1 %637 }
  0xd9   :  { %1360 = vmatmul.mubr.msk.f32.gmra.mrb[2].mxu0 %vm280_vm0, %v279_v14 }
  0xda   :  { %1364 = vmatprep.mubr.msk.f32.mxu0 %vm280_vm0, %v1634_v2 }
  0xdd   :  { %1365 = vmatmul.mubr.msk.f32.vlgmr.msra.gmra.mrb[0].mxu0 %vm280_vm0, %v1639_v3 }
  0xde   :  { %1367 = vmatprep.mubr.msk.f32.mxu0 %vm280_vm0, %v1646_v4 }
  0xe1   :  { %1368 = vmatmul.mubr.msk.f32.gmra.mrb[2].mxu0 %vm280_vm0, %v1651_v5 }
 0x1b0   :  { %v1366_v17 = vpop.f32.mrb[0].mxu0 }
 0x1b1   :  { %v488_v2 = vadd.f32 %v1366_v17, %v475_v15  ;;  %v448_v20 = vpop.f32.mrb[1].mxu0 }
 0x1b2   :  { %v487_v21 = vadd.f32 %v470_v16, %v448_v20  ;;  %v29_v20 = vld [vmem:[%s1827_s0 + $0x5] sm:$0xff] }
 0x1b3   :  { %v492_v3 = vmin.f32 %v488_v2, 20.0  ;;  %vm512_vm0 = vcmp.gt.f32.partialorder %v488_v2, 20.0 }
 0x1b4   :  { %v491_v23 = vmin.f32 %v487_v21, 20.0  ;;  %v1369_v4 = vpop.f32.mrb[2].mxu0  ;;  %vm511_vm3 = vcmp.gt.f32.partialorder %v487_v21, 20.0 }
 0x1b5   :  { %v497_v26 = vmul.f32 1.442695, %v492_v3  ;;  %v490_v5 = vadd.f32 %v1369_v4, %v485_v22  ;;  %v458_v28 = vpop.f32.mrb[3].mxu0  ;;  %v640_v3 = vpop.permute.xlu0 %639 }
 0x1b6   :  { %v495_v29 = vmul.f32 1.442695, %v491_v23  ;;  %v489_v30 = vadd.f32 %v480_v25, %v458_v28  ;;  %v642_v23 = vpop.permute.xlu1 %641 }
 0x1b7   :  { %1500 = vpow2.f32 %v497_v26  ;;  %v494_v31 = vmin.f32 %v490_v5, 20.0  ;;  %vm514_vm4 = vcmp.gt.f32.partialorder %v490_v5, 20.0 }
 0x1b8   :  { %1502 = vpow2.f32 %v495_v29  ;;  %v493_v32 = vmin.f32 %v489_v30, 20.0  ;;  %vm513_vm5 = vcmp.gt.f32.partialorder %v489_v30, 20.0 }
 0x1b9   :  { %v501_v33 = vmul.f32 1.442695, %v494_v31  ;;  %v644_v4 = vpop.permute.xlu0 %643 }
 0x1ba   :  { %v499_v34 = vmul.f32 1.442695, %v493_v32  ;;  %v838_v25 = vpop.permute.xlu1 %837 }
 0x1bb   :  { %1504 = vpow2.f32 %v501_v33 }
 0x1bc   :  { %1506 = vpow2.f32 %v499_v34 }
 0x1bd   :  { %v840_v26 = vpop.permute.xlu0 %839 }
 0x1c1   :  { %v1501_v35 = vpop.eup %1500  ;;  %v844_v28 = vpop.permute.xlu0 %843 }
 0x1c2   :  { %v1503_v36 = vpop.eup %1502  ;;  %v504_v37 = vadd.f32 2.0, %v1501_v35 }
 0x1c3   :  { %v503_v38 = vadd.f32 2.0, %v1503_v36 }
 0x1c4   :  { %v508_v39 = vmul.f32 %v1501_v35, %v504_v37 }
 0x1c5   :  { %v1505_v40 = vpop.eup %1504  ;;  %v507_v41 = vmul.f32 %v1503_v36, %v503_v38 }
 0x1c6   :  { %v1507_v42 = vpop.eup %1506  ;;  %v520_v43 = vadd.f32 2.0, %v508_v39  ;;  %v506_v44 = vadd.f32 2.0, %v1505_v40  ;;  %v516_v51 = vmul.f32 %v508_v39, %v488_v2 }
 0x1c7   :  { %v519_v45 = vadd.f32 2.0, %v507_v41  ;;  %v505_v46 = vadd.f32 2.0, %v1507_v42  ;;  %v515_v53 = vmul.f32 %v507_v41, %v487_v21 }
 0x1c8   :  { %1508 = vrcp.f32 %v520_v43  ;;  %v510_v47 = vmul.f32 %v1505_v40, %v506_v44 }
 0x1c9   :  { %1510 = vrcp.f32 %v519_v45  ;;  %v509_v48 = vmul.f32 %v1507_v42, %v505_v46 }
 0x1ca   :  { %v522_v49 = vadd.f32 2.0, %v510_v47  ;;  %v518_v57 = vmul.f32 %v510_v47, %v490_v5 }
 0x1cb   :  { %v521_v50 = vadd.f32 2.0, %v509_v48  ;;  %v517_v60 = vmul.f32 %v509_v48, %v489_v30 }
 0x1cc   :  { %1512 = vrcp.f32 %v522_v49 }
 0x1cd   :  { %1514 = vrcp.f32 %v521_v50 }
 0x1d2   :  { %v1509_v52 = vpop.eup %1508 }
 0x1d3   :  { %v1511_v54 = vpop.eup %1510  ;;  %v528_v55 = vmul.f32 %v1509_v52, %v516_v51 }
 0x1d4   :  { %v527_v56 = vmul.f32 %v1511_v54, %v515_v53 }
 0x1d5   :  { %v532_v58 = vsel %vm512_vm0, %v488_v2, %v528_v55  ;;  %v27_v2 = vld [vmem:[%s1827_s0] sm:$0xf] }
 0x1d6   :  { %v1513_v59 = vpop.eup %1512  ;;  %v531_v61 = vsel %vm511_vm3, %v487_v21, %v527_v56  ;;  %v30_v21 = vld [vmem:[%s1827_s0 + $0xd] sm:$0xff]  ;;  %vm1255_vm3 = vcmask 60416  }
 0x1d7   :  { %v1515_v62 = vpop.eup %1514  ;;  %v1434_v63 = vpack.c.bf16 %v532_v58, %v531_v61  ;;  %v530_v0 = vmul.f32 %v1513_v59, %v518_v57  ;;  %v1446_v22 = vpack.c.bf16 %v30_v21, %v29_v20  ;;  %v1011_v21 = vld [vmem:[%s1832_s5 + $0x8] sm:$0xff] }
 0x1d8   :  { %v529_v27 = vmul.f32 %v1515_v62, %v517_v60 }
 0x1d9   :  { %1435 = vmatprep.subr.bf16.mxu1 %v1434_v63  ;;  %v534_v1 = vsel %vm514_vm4, %v490_v5, %v530_v0  ;;  %v842_v5 = vpop.permute.xlu1 %841 }
 0x1da   :  { %1437 = vmatpush3.bf16.msra.mxu1 %v1434_v63  ;;  %v533_v6 = vsel %vm513_vm5, %v489_v30, %v529_v27 }
 0x1db   :  { %v1438_v7 = vpack.c.bf16 %v534_v1, %v533_v6 }
 0x1dd   :  { %1439 = vmatprep.subr.bf16.mxu1 %v1438_v7 }
 0x1de   :  { %1441 = vmatpush3.bf16.msra.mxu1 %v1438_v7 }
 0x1e1   :  { %1379 = vmatmul.mubr.msk.f32.vlgmr.msra.gmra.mrb[0].mxu1 %vm547_vm2, %v536_v8 }
 0x1e2   :  { %1385 = vmatprep.mubr.msk.f32.mxu1 %vm645_vm6, %v638_v12 }
 0x2b4   :  { %v1380_v14 = vpop.f32.mrb[0].mxu1 }
 0x2b5   :  { %v626_v24 = vadd.f32 %v1380_v14, %v545_v13  ;;  %v620_v15 = vpop.f32.mrb[1].mxu1 }
 0x2b6   :  { %v621_v16 = vadd.f32 %v620_v15, %v540_v11 }
 0x2b8   :  { %v1442_v17 = vpack.c.bf16 %v626_v24, %v621_v16 }
 0x2ba   :  { %1443 = vmatprep.subr.bf16.mxu1 %v1442_v17 }
 0x2bb   :  { %1445 = vmatpush3.bf16.msra.mxu1 %v1442_v17 }
 0x2bc   :  { %1391 = vmatprep.subr.msk.mxu1 %vm748_vm7, %v27_v2 }
 0x2be   :  { %1386 = vmatmul.mubr.msk.f32.vlgmr.msra.gmra.mrb[2].mxu1 %vm645_vm6, %v640_v3  ;;  %v1012_v3 = vld [vmem:[%s1832_s5 + $0x10] sm:$0xff] }
 0x2bf   :  { %1392 = vmatpush3.msk.msra.mxu1 %vm748_vm7, %v27_v2  ;;  %1388 = vmatprep.mubr.msk.f32.mxu1 %vm645_vm6, %v642_v23  ;;  %v1584_v23 = vmov 0.0|0.0  }
 0x2c0   :  { %1447 = vmatprep.subr.bf16.mxu1 %v1446_v22 }
 0x2c2   :  { %1389 = vmatmul.mubr.msk.f32.gmra.mrb[4].mxu1 %vm645_vm6, %v644_v4  ;;  %v1586_v4 = vmov 0.0  }
 0x2c3   :  { %1393 = vmatprep.mubr.msk.f32.mxu1 %vm739_vm8, %v1702_v18  ;;  %v950_v18 = vpop.permute.xlu0 %949 }
 0x2c6   :  { %1394 = vmatmul.mubr.msk.f32.vlgmr.msra.gmra.mrb[2].mxu1 %vm739_vm8, %v1667_v9  ;;  %v1010_v9 = vld [vmem:[%s1832_s5] sm:$0xff] }
 0x2c7   :  { %1449 = vmatpush3.bf16.msra.mxu1 %v1446_v22  ;;  %1396 = vmatprep.mubr.msk.f32.mxu1 %vm739_vm8, %v1708_v19  ;;  %v945_v19 = vpop.permute.xlu1 %944  ;;  %v960_v33 = vpop.permute.xlu0 %959  ;;  %v1013_v22 = vld [vmem:[%s1832_s5 + $0x18] sm:$0xff] }
 0x2c8   :  { %1417 = vmatprep.mubr.msk.f32.mxu0 %vm547_vm2, %v1010_v9 }
 0x2ca   :  { %1397 = vmatmul.mubr.msk.f32.gmra.mrb[4].mxu1 %vm739_vm8, %v1673_v10 }
 0x2cb   :  { %1403 = vmatprep.mubr.msk.f32.mxu1 %vm645_vm6, %v838_v25  ;;  %v955_v36 = vpop.permute.xlu1 %954  ;;  %v1022_v25 = vpop.permute.xlu0 %1021 }
 0x2ce   :  { %1404 = vmatmul.mubr.msk.f32.vlgmr.msra.gmra.mrb[2].mxu1 %vm645_vm6, %v840_v26 }
 0x2cf   :  { %1406 = vmatprep.mubr.msk.f32.mxu1 %vm645_vm6, %v842_v5  ;;  %v1017_v26 = vpop.permute.xlu1 %1016 }
 0x2d2   :  { %1407 = vmatmul.mubr.msk.f32.gmra.mrb[4].mxu1 %vm645_vm6, %v844_v28 }
 0x3a1   :  { %v1405_v10 = vpop.f32.mrb[2].mxu1 }
 0x3a2   :  { %v963_v29 = vadd.f32 %v1405_v10, %v950_v18  ;;  %v919_v30 = vpop.f32.mrb[3].mxu1  ;;  %v1032_v10 = vpop.permute.xlu0 %1031 }
 0x3a3   :  { %v962_v31 = vadd.f32 %v945_v19, %v919_v30 }
 0x3a4   :  { %v967_v32 = vmin.f32 %v963_v29, 20.0  ;;  %vm987_vm9 = vcmp.gt.f32.partialorder %v963_v29, 20.0 }
 0x3a5   :  { %v966_v34 = vmin.f32 %v962_v31, 20.0  ;;  %v1408_v35 = vpop.f32.mrb[4].mxu1  ;;  %vm986_vm10 = vcmp.gt.f32.partialorder %v962_v31, 20.0 }
 0x3a6   :  { %v972_v37 = vmul.f32 1.442695, %v967_v32  ;;  %v965_v38 = vadd.f32 %v1408_v35, %v960_v33  ;;  %v929_v39 = vpop.f32.mrb[5].mxu1 }
 0x3a7   :  { %v970_v40 = vmul.f32 1.442695, %v966_v34  ;;  %v964_v41 = vadd.f32 %v955_v36, %v929_v39 }
 0x3a8   :  { %1516 = vpow2.f32 %v972_v37  ;;  %v969_v42 = vmin.f32 %v965_v38, 20.0  ;;  %vm989_vm11 = vcmp.gt.f32.partialorder %v965_v38, 20.0 }
 0x3a9   :  { %1518 = vpow2.f32 %v970_v40  ;;  %v968_v43 = vmin.f32 %v964_v41, 20.0  ;;  %vm988_vm12 = vcmp.gt.f32.partialorder %v964_v41, 20.0 }
 0x3aa   :  { %v976_v44 = vmul.f32 1.442695, %v969_v42 }
 0x3ab   :  { %v974_v45 = vmul.f32 1.442695, %v968_v43 }
 0x3ac   :  { %1520 = vpow2.f32 %v976_v44 }
 0x3ad   :  { %1522 = vpow2.f32 %v974_v45 }
 0x3b2   :  { %v1517_v46 = vpop.eup %1516 }
 0x3b3   :  { %v1519_v47 = vpop.eup %1518  ;;  %v979_v48 = vadd.f32 2.0, %v1517_v46 }
 0x3b4   :  { %v978_v49 = vadd.f32 2.0, %v1519_v47 }
 0x3b5   :  { %v983_v50 = vmul.f32 %v1517_v46, %v979_v48 }
 0x3b6   :  { %v1521_v51 = vpop.eup %1520  ;;  %v982_v52 = vmul.f32 %v1519_v47, %v978_v49 }
 0x3b7   :  { %v1523_v53 = vpop.eup %1522  ;;  %v995_v54 = vadd.f32 2.0, %v983_v50  ;;  %v981_v55 = vadd.f32 2.0, %v1521_v51  ;;  %v991_v62 = vmul.f32 %v983_v50, %v963_v29 }
 0x3b8   :  { %v994_v56 = vadd.f32 2.0, %v982_v52  ;;  %v980_v57 = vadd.f32 2.0, %v1523_v53  ;;  %v990_v0 = vmul.f32 %v982_v52, %v962_v31 }
 0x3b9   :  { %1524 = vrcp.f32 %v995_v54  ;;  %v985_v58 = vmul.f32 %v1521_v51, %v981_v55 }
 0x3ba   :  { %1526 = vrcp.f32 %v994_v56  ;;  %v984_v59 = vmul.f32 %v1523_v53, %v980_v57 }
 0x3bb   :  { %v997_v60 = vadd.f32 2.0, %v985_v58  ;;  %v993_v7 = vmul.f32 %v985_v58, %v965_v38 }
 0x3bc   :  { %v996_v61 = vadd.f32 2.0, %v984_v59  ;;  %v992_v12 = vmul.f32 %v984_v59, %v964_v41 }
 0x3bd   :  { %1528 = vrcp.f32 %v997_v60 }
 0x3be   :  { %1530 = vrcp.f32 %v996_v61 }
 0x3c3   :  { %v1525_v63 = vpop.eup %1524 }
 0x3c4   :  { %v1527_v27 = vpop.eup %1526  ;;  %v1003_v1 = vmul.f32 %v1525_v63, %v991_v62 }
 0x3c5   :  { %v1002_v6 = vmul.f32 %v1527_v27, %v990_v0 }
 0x3c6   :  { %v1007_v8 = vsel %vm987_vm9, %v963_v29, %v1003_v1 }
 0x3c7   :  { %v1529_v11 = vpop.eup %1528  ;;  %v1006_v13 = vsel %vm986_vm10, %v962_v31, %v1002_v6  ;;  %v1027_v31 = vpop.permute.xlu1 %1026 }
 0x3c8   :  { %v1531_v14 = vpop.eup %1530  ;;  %v1450_v24 = vpack.c.bf16 %v1007_v8, %v1006_v13  ;;  %v1005_v15 = vmul.f32 %v1529_v11, %v993_v7 }
 0x3c9   :  { %v1004_v16 = vmul.f32 %v1531_v14, %v992_v12 }
 0x3ca   :  { %1451 = vmatprep.subr.bf16.mxu0 %v1450_v24  ;;  %v1009_v17 = vsel %vm989_vm11, %v965_v38, %v1005_v15  ;;  %v1175_v15 = vld [vmem:[%s1833_s6] sm:$0xf] }
 0x3cb   :  { %1453 = vmatpush3.bf16.msra.mxu0 %v1450_v24  ;;  %v1008_v2 = vsel %vm988_vm12, %v964_v41, %v1004_v16  ;;  %v1179_v16 = vpop.permute.xlu1 %1178 }
 0x3cc   :  { %v1454_v20 = vpack.c.bf16 %v1009_v17, %v1008_v2 }
 0x3ce   :  { %1455 = vmatprep.subr.bf16.mxu0 %v1454_v20 }
 0x3cf   :  { %1457 = vmatpush3.bf16.msra.mxu0 %v1454_v20 }
 0x3d0   :  { %1458 = vmatprep.subr.bf16.mxu0 %v1584_v23 }
 0x3d2   :  { %1418 = vmatmul.mubr.msk.f32.vlgmr.msra.gmra.mrb[4].mxu0 %vm547_vm2, %v1011_v21 }
 0x3d3   :  { %1420 = vmatprep.mubr.msk.f32.mxu0 %vm547_vm2, %v1012_v3 }
 0x3d6   :  { %1421 = vmatmul.mubr.msk.f32.gmra.mrb[6].mxu0 %vm547_vm2, %v1013_v22 }
 0x3d7   :  { %1431 = vmatprep.mubr.msk.f32.mxu0 %vm1585_vm13, %v1586_v4 }
 0x4a5   :  { %v1419_v5 = vpop.f32.mrb[4].mxu0 }
 0x4a6   :  { %v1118_v28 = vadd.f32 %v1419_v5, %v1022_v25  ;;  %v1112_v9 = vpop.f32.mrb[5].mxu0 }
 0x4a7   :  { %v1113_v18 = vadd.f32 %v1112_v9, %v1017_v26 }
 0x4a8   :  { %v1132_v19 = vmin.f32 %v1118_v28, 20.0  ;;  %vm1152_vm14 = vcmp.gt.f32.partialorder %v1118_v28, 20.0 }
 0x4a9   :  { %v1131_v29 = vmin.f32 %v1113_v18, 20.0  ;;  %v1422_v30 = vpop.f32.mrb[6].mxu0  ;;  %vm1151_vm15 = vcmp.gt.f32.partialorder %v1113_v18, 20.0 }
 0x4aa   :  { %v1137_v32 = vmul.f32 1.442695, %v1132_v19  ;;  %v1128_v33 = vadd.f32 %v1422_v30, %v1032_v10  ;;  %v1122_v34 = vpop.f32.mrb[7].mxu0 }
 0x4ab   :  { %v1135_v35 = vmul.f32 1.442695, %v1131_v29  ;;  %v1123_v36 = vadd.f32 %v1122_v34, %v1027_v31 }
 0x4ac   :  { %1532 = vpow2.f32 %v1137_v32  ;;  %v1134_v37 = vmin.f32 %v1128_v33, 20.0  ;;  %vm1154_vm1 = vcmp.gt.f32.partialorder %v1128_v33, 20.0 }
 0x4ad   :  { %1534 = vpow2.f32 %v1135_v35  ;;  %v1133_v38 = vmin.f32 %v1123_v36, 20.0  ;;  %vm1153_vm0 = vcmp.gt.f32.partialorder %v1123_v36, 20.0 }
 0x4ae   :  { %v1141_v39 = vmul.f32 1.442695, %v1134_v37 }
 0x4af   :  { %v1139_v40 = vmul.f32 1.442695, %v1133_v38 }
 0x4b0   :  { %1536 = vpow2.f32 %v1141_v39 }
 0x4b1   :  { %1538 = vpow2.f32 %v1139_v40 }
 0x4b6   :  { %v1533_v41 = vpop.eup %1532 }
 0x4b7   :  { %v1535_v42 = vpop.eup %1534  ;;  %v1144_v43 = vadd.f32 2.0, %v1533_v41 }
 0x4b8   :  { %v1143_v44 = vadd.f32 2.0, %v1535_v42 }
 0x4b9   :  { %v1148_v45 = vmul.f32 %v1533_v41, %v1144_v43 }
 0x4ba   :  { %v1537_v46 = vpop.eup %1536  ;;  %v1147_v47 = vmul.f32 %v1535_v42, %v1143_v44 }
 0x4bb   :  { %v1539_v48 = vpop.eup %1538  ;;  %v1160_v49 = vadd.f32 2.0, %v1148_v45  ;;  %v1146_v50 = vadd.f32 2.0, %v1537_v46  ;;  %v1156_v57 = vmul.f32 %v1148_v45, %v1118_v28 }
 0x4bc   :  { %v1159_v51 = vadd.f32 2.0, %v1147_v47  ;;  %v1145_v52 = vadd.f32 2.0, %v1539_v48  ;;  %v1155_v59 = vmul.f32 %v1147_v47, %v1113_v18 }
 0x4bd   :  { %1540 = vrcp.f32 %v1160_v49  ;;  %v1150_v53 = vmul.f32 %v1537_v46, %v1146_v50 }
 0x4be   :  { %1542 = vrcp.f32 %v1159_v51  ;;  %v1149_v54 = vmul.f32 %v1539_v48, %v1145_v52 }
 0x4bf   :  { %v1162_v55 = vadd.f32 2.0, %v1150_v53  ;;  %v1158_v63 = vmul.f32 %v1150_v53, %v1128_v33 }
 0x4c0   :  { %v1161_v56 = vadd.f32 2.0, %v1149_v54  ;;  %v1157_v1 = vmul.f32 %v1149_v54, %v1123_v36 }
 0x4c1   :  { %1544 = vrcp.f32 %v1162_v55 }
 0x4c2   :  { %1546 = vrcp.f32 %v1161_v56 }
 0x4c7   :  { %v1541_v58 = vpop.eup %1540 }
 0x4c8   :  { %v1543_v60 = vpop.eup %1542  ;;  %v1168_v61 = vmul.f32 %v1541_v58, %v1156_v57 }
 0x4c9   :  { %v1167_v62 = vmul.f32 %v1543_v60, %v1155_v59 }
 0x4ca   :  { %v1172_v0 = vsel %vm1152_vm14, %v1118_v28, %v1168_v61 }
 0x4cb   :  { %v1545_v27 = vpop.eup %1544  ;;  %v1171_v6 = vsel %vm1151_vm15, %v1113_v18, %v1167_v62 }
 0x4cc   :  { %v1547_v7 = vpop.eup %1546  ;;  %v1170_v8 = vmul.f32 %v1545_v27, %v1158_v63  ;;  %v1459_v11 = vpack.c.bf16 %v1172_v0, %v1171_v6 }
 0x4cd   :  { %v1169_v12 = vmul.f32 %v1547_v7, %v1157_v1 }
 0x4ce   :  { %1460 = vmatpush3.bf16.msra.mxu0 %v1459_v11  ;;  %v1174_v13 = vsel %vm1154_vm1, %v1128_v33, %v1170_v8 }
 0x4cf   :  { %1461 = vmatprep.subr.bf16.mxu0 %v1584_v23  ;;  %v1173_v14 = vsel %vm1153_vm0, %v1123_v36, %v1169_v12 }
 0x4d0   :  { %v1462_v24 = vpack.c.bf16 %v1174_v13, %v1173_v14 }
 0x4d2   :  { %1463 = vmatpush3.bf16.msra.mxu0 %v1462_v24 }
 0x4d5   :  { %1432 = vmatmul.mubr.msk.f32.vlgmr.msra.gmra.mrb[8].mxu0 %vm547_vm2, %v1175_v15 }
 0x5a8   :  { %v1250_v17 = vpop.f32.mrb[8].mxu0 }
 0x5a9   :  { %v1251_v2 = vadd.f32 %v1250_v17, %v1179_v16  ;;  %v1433_v20 = vpop.f32.mrb[9].mxu0 }
 0x5ab   :  { %1548 = vtanh.f32 %v1251_v2 }
 0x5b5   :  { %v1549_v21 = vpop.eup %1548 }
 0x5b6   :  { %1256 = vst.msk [vmem:[#allocation2] sm:$0xf] %vm1255_vm3, %v1549_v21 }
 0x5b7   :  { %1561 = shalt.err (!%p1558_p4)
}
 0x5b8   :  { %s1562_s19 = scalar_lea.hbm %s1834_s7, 64 }
 0x5b9   :  { %p1563_p5 = scmp.ne.s32.totalorder %s1834_s7, %s1562_s19  ;;  %p1566_p6 = scmp.lt.u32.totalorder %s1562_s19, %s1834_s7 }
 0x5bb   :  { %p1568_p7 = pnand %p1566_p6, %p1563_p5 }
 0x5bd   :  { %1571 = shalt.err (!%p1568_p7)
}
 0x5be   :  { %1266 = dma.vmem_to_hbm [thread:$0]  %s1264_s23, 64, %s1834_s7, [#allocation3]  }
 0x5bf   :  { %1572 = dma.done.wait [#allocation3], 64  }
 0x5c0   :  { %1573 = vsyncadd [#allocation3], 4294967232 }
 0x5c1   :  { %1270 = vsyncpa [#allocation3], 1 }

</bundles_post_ra>
